<compile_context>
chip_gen: v6e
topology: v6e:2x2x1
jax: 0.10.0
libtpu: 0.0.40
codegen_flags: <defaults>
</compile_context>

<pallas_src>
import jax
import jax.numpy as jnp
from jax import lax
from jax.experimental import pallas as pl
from jax.experimental.pallas import tpu as pltpu


def _round_up(n: int, m: int) -> int:
    return ((n + m - 1) // m) * m


def _choose_tb(b_pad: int, max_tile_b: int) -> int:
    """Largest 128-multiple tile that divides b_pad and fits max_tile_b,
    preferring >= 2 grid steps (v7x megacore + DMA/compute overlap)."""
    units = b_pad // 128
    max_units = max(1, _round_up(max_tile_b, 128) // 128)
    tb_units = 1
    for d in range(min(units, max_units), 0, -1):
        if units % d == 0:
            tb_units = d
            break
    if units // tb_units < 2 and units >= 2:
        for d in range(tb_units - 1, 0, -1):
            if units % d == 0 and units // d >= 2:
                tb_units = d
                break
    return tb_units * 128


def crop_health_kernel(x_ref, w1_ref, b1_ref, w2_ref, b2_ref, out_ref):
    # x tile arrives in native (TB, In) f32; cast to bf16 in-kernel and
    # contract on In so batch sits on the MXU N / lane axis -> (H, TB).
    x_bf16 = x_ref[...].astype(jnp.bfloat16)
    h = lax.dot_general(
        w1_ref[...], x_bf16,
        dimension_numbers=(((1,), (1,)), ((), ())),
        preferred_element_type=jnp.float32)                 # (H, TB) f32
    h = jnp.maximum(h + b1_ref[...], 0.0)                   # b1 (H,1) lane-broadcast

    # fc2: (Out, H)bf16 @ (H, TB)bf16 -> (Out, TB) f32, bias + sigmoid in f32.
    y = jnp.dot(w2_ref[...], h.astype(jnp.bfloat16),
                preferred_element_type=jnp.float32)         # (Out, TB) f32
    y = jax.nn.sigmoid(y + b2_ref[...])                     # b2 (Out,1) lane-broadcast

    out_ref[...] = y.astype(out_ref.dtype)


def crop_health_forward(x, w1, b1, w2, b2, *, max_tile_b=4096):
    """Forward pass of CropHealthModel.

    x : (B, In) f32
    w1: (H, In), b1: (H,)   -- PyTorch nn.Linear layout (out_features, in_features)
    w2: (Out, H), b2: (Out,)
    Returns (B, Out) f32 == sigmoid(relu(x @ w1.T + b1) @ w2.T + b2).
    """
    B, In = x.shape
    H = w1.shape[0]
    Out = w2.shape[0]

    # Pad the batch only to a multiple of 128 (bounded waste), native layout.
    B_pad = _round_up(B, 128)
    if B_pad != B:
        x = jnp.pad(x, ((0, B_pad - B), (0, 0)))
    TB = _choose_tb(B_pad, max_tile_b)
    grid = (B_pad // TB,)

    # Small weights as bf16 matmul operands; biases stay f32 as (N, 1) columns.
    w1_bf16 = w1.astype(jnp.bfloat16)
    w2_bf16 = w2.astype(jnp.bfloat16)
    b1_col = b1.reshape(H, 1).astype(jnp.float32)
    b2_col = b2.reshape(Out, 1).astype(jnp.float32)

    out_T = pl.pallas_call(
        crop_health_kernel,
        out_shape=jax.ShapeDtypeStruct((Out, B_pad), jnp.float32),
        grid_spec=pl.GridSpec(
            grid=grid,
            in_specs=[
                pl.BlockSpec((TB, In), lambda i: (i, 0)),   # x tile: pipelined over batch
                pl.BlockSpec((H, In), lambda i: (0, 0)),    # weights/biases stay resident
                pl.BlockSpec((H, 1), lambda i: (0, 0)),
                pl.BlockSpec((Out, H), lambda i: (0, 0)),
                pl.BlockSpec((Out, 1), lambda i: (0, 0)),
            ],
            out_specs=pl.BlockSpec((Out, TB), lambda i: (0, i)),  # lane-dense stores
        ),
        compiler_params=pltpu.CompilerParams(
            dimension_semantics=("parallel",),   # v7x: shard batch tiles across 2 TCs
        ),
    )(x, w1_bf16, b1_col, w2_bf16, b2_col)

    return out_T.T[:B]                           # back to (B, Out)


if __name__ == "__main__":
    # Small shapes consistent with the module: input=16, hidden=32, output=8.
    # B=512 -> TB=256, grid=(2,): exercises the pipelined / parallel grid.
    B, INPUT, HIDDEN, OUTPUT = 512, 16, 32, 8

    key = jax.random.PRNGKey(0)
    kx, kw1, kb1, kw2, kb2 = jax.random.split(key, 5)

    x = jax.random.normal(kx, (B, INPUT), dtype=jnp.float32)

    # Deterministic init mimicking nn.Linear's U(-1/sqrt(in), 1/sqrt(in)).
    lim1 = 1.0 / jnp.sqrt(jnp.float32(INPUT))
    lim2 = 1.0 / jnp.sqrt(jnp.float32(HIDDEN))
    w1 = jax.random.uniform(kw1, (HIDDEN, INPUT), jnp.float32, -lim1, lim1)
    b1 = jax.random.uniform(kb1, (HIDDEN,), jnp.float32, -lim1, lim1)
    w2 = jax.random.uniform(kw2, (OUTPUT, HIDDEN), jnp.float32, -lim2, lim2)
    b2 = jax.random.uniform(kb2, (OUTPUT,), jnp.float32, -lim2, lim2)

    out = crop_health_forward(x, w1, b1, w2, b2)
    out = jax.block_until_ready(out)
    assert out.shape == (B, OUTPUT)

    # Reference 1: exact kernel math (bf16 matmul operands, f32 accumulation).
    h_ref = jnp.dot(w1.astype(jnp.bfloat16), x.astype(jnp.bfloat16).T,
                    preferred_element_type=jnp.float32)
    h_ref = jnp.maximum(h_ref + b1[:, None], 0.0)
    y_ref = jnp.dot(w2.astype(jnp.bfloat16), h_ref.astype(jnp.bfloat16),
                    preferred_element_type=jnp.float32)
    ref_bf16 = jax.nn.sigmoid(y_ref + b2[:, None]).T

    # Reference 2: PyTorch-equivalent full-f32 forward (looser tol: bf16 matmuls).
    ref_f32 = jax.nn.sigmoid(jnp.maximum(x @ w1.T + b1, 0.0) @ w2.T + b2)

    assert jnp.allclose(out, ref_bf16, atol=1e-3, rtol=1e-3), "mismatch vs bf16 reference"
    assert jnp.allclose(out, ref_f32, atol=2e-2, rtol=2e-2), "mismatch vs f32 reference"

    print("KERNEL_OK")
</pallas_src>

<mosaic_0001>
module attributes {stable_mosaic.version = 11 : i64} {
  func.func @crop_health_kernel(%arg0: i32, %arg1: memref<256x16xf32, #tpu.memory_space<vmem>>, %arg2: memref<32x16xbf16, #tpu.memory_space<vmem>>, %arg3: memref<32x1xf32, #tpu.memory_space<vmem>>, %arg4: memref<8x32xbf16, #tpu.memory_space<vmem>>, %arg5: memref<8x1xf32, #tpu.memory_space<vmem>>, %arg6: memref<8x256xf32, #tpu.memory_space<vmem>>) attributes {dimension_semantics = [#tpu.dimension_semantics<parallel>], iteration_bounds = array<i64: 2>, scalar_prefetch = 0 : i64, scratch_operands = 0 : i64, tpu.core_type = #tpu.core_type<tc>, window_params = [{transform_indices = @transform_0, window_bounds = array<i64: 256, 16>}, {pipeline_mode = #tpu.pipeline_mode<synchronous>, transform_indices = @transform_1, window_bounds = array<i64: 32, 16>}, {pipeline_mode = #tpu.pipeline_mode<synchronous>, transform_indices = @transform_2, window_bounds = array<i64: 32, 1>}, {pipeline_mode = #tpu.pipeline_mode<synchronous>, transform_indices = @transform_3, window_bounds = array<i64: 8, 32>}, {pipeline_mode = #tpu.pipeline_mode<synchronous>, transform_indices = @transform_4, window_bounds = array<i64: 8, 1>}, {transform_indices = @transform_5, window_bounds = array<i64: 8, 256>}]} {
    %c0 = arith.constant 0 : index
    %c0_0 = arith.constant 0 : index
    %0 = vector.load %arg1[%c0, %c0_0] : memref<256x16xf32, #tpu.memory_space<vmem>>, vector<256x16xf32>
    %1 = arith.truncf %0 : vector<256x16xf32> to vector<256x16xbf16>
    %c0_1 = arith.constant 0 : index
    %c0_2 = arith.constant 0 : index
    %2 = vector.load %arg2[%c0_1, %c0_2] : memref<32x16xbf16, #tpu.memory_space<vmem>>, vector<32x16xbf16>
    %cst = arith.constant dense<0.000000e+00> : vector<32x256xf32>
    %3 = tpu.matmul %2, %1, %cst {dimension_numbers = #tpu.dot_dimension_numbers<[1], [1], [0], [0], [0, 0, 1, 0], [], []>} : vector<32x16xbf16>, vector<256x16xbf16>, vector<32x256xf32> -> vector<32x256xf32>
    %c0_3 = arith.constant 0 : index
    %c0_4 = arith.constant 0 : index
    %4 = vector.load %arg3[%c0_3, %c0_4] : memref<32x1xf32, #tpu.memory_space<vmem>>, vector<32x1xf32>
    %5 = vector.broadcast %4 : vector<32x1xf32> to vector<32x256xf32>
    %6 = arith.addf %3, %5 : vector<32x256xf32>
    %cst_5 = arith.constant 0.000000e+00 : f32
    %7 = vector.broadcast %cst_5 : f32 to vector<32x256xf32>
    %8 = arith.maximumf %6, %7 : vector<32x256xf32>
    %c0_6 = arith.constant 0 : index
    %c0_7 = arith.constant 0 : index
    %9 = vector.load %arg4[%c0_6, %c0_7] : memref<8x32xbf16, #tpu.memory_space<vmem>>, vector<8x32xbf16>
    %10 = arith.truncf %8 : vector<32x256xf32> to vector<32x256xbf16>
    %cst_8 = arith.constant dense<0.000000e+00> : vector<8x256xf32>
    %11 = tpu.matmul %9, %10, %cst_8 {dimension_numbers = #tpu.dot_dimension_numbers<[1], [0], [0], [1], [0, 0, 1, 1], [], []>} : vector<8x32xbf16>, vector<32x256xbf16>, vector<8x256xf32> -> vector<8x256xf32>
    %c0_9 = arith.constant 0 : index
    %c0_10 = arith.constant 0 : index
    %12 = vector.load %arg5[%c0_9, %c0_10] : memref<8x1xf32, #tpu.memory_space<vmem>>, vector<8x1xf32>
    %13 = vector.broadcast %12 : vector<8x1xf32> to vector<8x256xf32>
    %14 = arith.addf %11, %13 : vector<8x256xf32>
    %15 = arith.negf %14 : vector<8x256xf32>
    %16 = math.exp %15 : vector<8x256xf32>
    %cst_11 = arith.constant 1.000000e+00 : f32
    %17 = vector.broadcast %cst_11 : f32 to vector<8x256xf32>
    %18 = arith.addf %17, %16 : vector<8x256xf32>
    %19 = arith.divf %17, %18 : vector<8x256xf32>
    %c0_12 = arith.constant 0 : index
    %c0_13 = arith.constant 0 : index
    %20 = vector.load %arg6[%c0_12, %c0_13] : memref<8x256xf32, #tpu.memory_space<vmem>>, vector<8x256xf32>
    tpu.vector_store %arg6[%c0_12, %c0_13], %19 {strides = array<i32>} : memref<8x256xf32, #tpu.memory_space<vmem>>, vector<8x256xf32>,
    return
  }
  func.func @transform_0(%arg0: i32) -> (i32, i32) {
    %c0_i32 = arith.constant 0 : i32
    %c0_i32_0 = arith.constant 0 : i32
    return %arg0, %c0_i32 : i32, i32
  }
  func.func @transform_1(%arg0: i32) -> (i32, i32) {
    %c0_i32 = arith.constant 0 : i32
    %c0_i32_0 = arith.constant 0 : i32
    %c0_i32_1 = arith.constant 0 : i32
    return %c0_i32, %c0_i32_0 : i32, i32
  }
  func.func @transform_2(%arg0: i32) -> (i32, i32) {
    %c0_i32 = arith.constant 0 : i32
    %c0_i32_0 = arith.constant 0 : i32
    %c0_i32_1 = arith.constant 0 : i32
    return %c0_i32, %c0_i32_0 : i32, i32
  }
  func.func @transform_3(%arg0: i32) -> (i32, i32) {
    %c0_i32 = arith.constant 0 : i32
    %c0_i32_0 = arith.constant 0 : i32
    %c0_i32_1 = arith.constant 0 : i32
    return %c0_i32, %c0_i32_0 : i32, i32
  }
  func.func @transform_4(%arg0: i32) -> (i32, i32) {
    %c0_i32 = arith.constant 0 : i32
    %c0_i32_0 = arith.constant 0 : i32
    %c0_i32_1 = arith.constant 0 : i32
    return %c0_i32, %c0_i32_0 : i32, i32
  }
  func.func @transform_5(%arg0: i32) -> (i32, i32) {
    %c0_i32 = arith.constant 0 : i32
    %c0_i32_0 = arith.constant 0 : i32
    return %c0_i32, %arg0 : i32, i32
  }
}

</mosaic_0001>

<bundles_post_ra>
// kernel: tpu_custom_call.1
= control target key start
LH: loop header
LB: loop body
LE: loop exit
PB: predicated region body
PF: predicated region fallthrough
CT: control target
= control target key end

     0   :  { %10 = vsyncpa [#allocation3], 0  ;;  %s941_s0 = inlined_call_operand.vmem [shape: f32[512,16], index: 0, kind: input, shape index: {}]   ;;  %s942_s1 = inlined_call_operand.vmem [shape: bf16[32,16], index: 1, kind: input, shape index: {}]   ;;  %s943_s2 = inlined_call_operand.vmem [shape: f32[32,1], index: 2, kind: input, shape index: {}]   ;;  %s944_s3 = inlined_call_operand.vmem [shape: bf16[8,32], index: 3, kind: input, shape index: {}]   ;;  %s945_s4 = inlined_call_operand.vmem [shape: f32[8,1], index: 4, kind: input, shape index: {}]   ;;  %s946_s5 = inlined_call_operand.hbm [shape: f32[8,512], index: 5, kind: output, shape index: {}]  }
   0x1   :  { %12 = vsyncpa [#allocation3 + $0x1], 0  ;;  %s767_s18 = smov 0   ;;  %s769_s19 = smov 0  }
   0x2   :  { %s771_s20 = smov 0   ;;  %s773_s21 = smov 0  }
   0x3 LB: > { %s788_s22 = sadd.s32 4294967295, %s733_s21   ;;  %s573_s23 = sadd.s32 4294967294, %s733_s21   ;;  %s733_s21 = sphi %s773_s21, %s952_s21   ;;  %s729_s20 = sphi %s771_s20, %s951_s20   ;;  %s725_s19 = sphi %s769_s19, %s950_s19   ;;  %s721_s18 = sphi %s767_s18, %s949_s18  }
   0x4   : > { %s792_s24 = sadd.s32 1, %s733_s21   ;;  %s135_s25 = sadd.s32 1, %s729_s20 }
   0x5   : > { %s132_s26 = ssub.s32 %s733_s21, %s792_s24  ;;  %p145_p0 = scmp.ne.s32.totalorder %s729_s20, %s725_s19 }
   0x6   : > { %p133_p1 = scmp.eq.s32.totalorder %s132_s26, 0  ;;  %p146_p2 = scmp.eq.s32.totalorder %s788_s22, 1 }
   0x7   : > { %p151_p3 = scmp.ne.s32.totalorder %s725_s19, %s721_s18  ;;  %p152_p4 = scmp.eq.s32.totalorder %s573_s23, 1 }
   0x8   : > { %s803_s27 = scalar_select %p133_p1, %s729_s20, %s135_s25  }
   0x9   : > { %p805_p5 = por %p146_p2, %p145_p0  ;;  %p809_p6 = por %p152_p4, %p151_p3 }
   0xa   : > { %p576_p7 = scmp.ge.s32.totalorder %s733_s21, 1  ;;  %p191_p8 = scmp.lt.s32.totalorder %s733_s21, 3 }
   0xc   : > { %p192_p9 = pnand %p576_p7, %p191_p8 }
   0xd   : > { %s578_s30 = sshll.u32 (!%p192_p9), %s788_s22, 5  ;;  %s216_s10 = sand.u32 (!%p192_p9), 1, %s725_s19  }
   0xe   : > { %195 = sbr.rel (%p192_p9) target bundleno = 553 (0x229), region = 40  ;;  %p220_p10 = scmp.lt.s32.totalorder (!%p192_p9), %s578_s30, 63 }
   0xf   : > { %s577_s11 = sshll.u32 (!%p192_p9), %s216_s10, 4  ;;  %s500_s23 = scalar_lea.sflag (!%p192_p9), [#allocation3], %s216_s10 }
  0x10   : > { %s218_s13 = scalar_lea.vmem (!%p192_p9), [#allocation2], %s577_s11  ;;  %s736_s26 = smov (!%p192_p9), [#allocation2]  }
  0x11   : > { %s514_s14 = sshll.u32 (!%p192_p9), %s218_s13, 4  ;;  %s515_s14 = int_to_ptr.vmem [resolvable:$true] %s514_s14 }
  0x12   : > { %s673_s25 = scalar_lea.vmem (!%p192_p9), %s515_s14, 256 }
  0x13   : > { %v819_v0 = vld [vmem:[%s942_s1] sm:$0xff]   ;;  %vm313_vm0 = vcmask 130048   ;;  %v281_v2 = vld [vmem:[%s943_s2 + $0x10] sm:$0xff]  ;;  %s954_s30 = smov (!%p220_p10, %s578_s30), 63  ;;  %v735_v3 = vmov 0   ;;  %v280_v4 = vld [vmem:[%s943_s2 + $0x8] sm:$0xff]  ;;  %p674_p11 = scmp.ne.s32.totalorder %s515_s14, %s673_s25 }
  0x14   : > { %v279_v1 = vld [vmem:[%s943_s2] sm:$0xff]  ;;  %609 = vmatprep.mubr.msk.bf16.mxu0 %vm313_vm0, %v819_v0  ;;  %662 = vset.pattern.permute.xlu1 %v735_v3  ;;  %s579_s12 = sshll.u32 %s954_s30, 3  ;;  %v282_v5 = vld [vmem:[%s943_s2 + $0x18] sm:$0xff]  ;;  %v664_v63 = vld [vmem:[%s942_s1 + $0x8] sm:$0xff]   ;;  %vm440_vm1 = vcmask 261120  }
  0x15   : > { %285 = vperm.xlu1 %662, %v279_v1   ;;  %661 = vset.pattern.permute.xlu0 %v735_v3  ;;  %s835_s17 = scalar_lea.vmem %s941_s0, %s579_s12  ;;  %v434_v17 = vld [vmem:[%s945_s4] sm:$0xff]  ;;  %s592_s12 = sshll.u32 %s788_s22, 8 }
  0x16   : > { %295 = vperm.xlu0 %661, %v281_v2   ;;  %476 = vmatprep.mubr.bf16.mxu1 %v735_v3  ;;  %v257_v6 = vld [vmem:[%s835_s17 + $0xf0] sm:$0xff]  ;;  %v258_v7 = vld [vmem:[%s835_s17 + $0xf8] sm:$0xff]  ;;  %v255_v11 = vld [vmem:[%s835_s17 + $0xe0] sm:$0xff]  ;;  %p675_p12 = pnand %p674_p11, %p805_p5  ;;  %s677_s22 = sshll.u32 %s736_s26, 4  ;;  %s678_s22 = int_to_ptr.vmem [resolvable:$false] %s677_s22 }
  0x17   : > { %v241_v8 = vld [vmem:[%s835_s17 + $0x70] sm:$0xff]  ;;  %v274_v9 = vpack.c.bf16 %v258_v7, %v257_v6  ;;  %v242_v10 = vld [vmem:[%s835_s17 + $0x78] sm:$0xff]  ;;  %v256_v12 = vld [vmem:[%s835_s17 + $0xe8] sm:$0xff]  ;;  %s679_s30 = scalar_lea.vmem %s678_s22, 512  ;;  %p680_p0 = scmp.lt.s32.totalorder %s515_s14, %s678_s22 }
  0x18   : > { %v266_v13 = vpack.c.bf16 %v242_v10, %v241_v8  ;;  %v273_v14 = vpack.c.bf16 %v256_v12, %v255_v11  ;;  %v239_v15 = vld [vmem:[%s835_s17 + $0x60] sm:$0xff]  ;;  %v240_v16 = vld [vmem:[%s835_s17 + $0x68] sm:$0xff]  ;;  %v253_v20 = vld [vmem:[%s835_s17 + $0xd0] sm:$0xff]  ;;  %p676_p13 = pneg %p675_p12  ;;  %p681_p1 = scmp.lt.s32.totalorder %s679_s30, %s673_s25 }
  0x19   : > { %290 = vperm.xlu1 %662, %v280_v4   ;;  %613 = vmatprep.subr.msk.bf16.mxu0 %vm313_vm0, %v274_v9  ;;  %v265_v19 = vpack.c.bf16 %v240_v16, %v239_v15  ;;  %v254_v21 = vld [vmem:[%s835_s17 + $0xd8] sm:$0xff]  ;;  %v237_v24 = vld [vmem:[%s835_s17 + $0x50] sm:$0xff]  ;;  %v251_v27 = vld [vmem:[%s835_s17 + $0xc0] sm:$0xff] }
  0x1a   : > { %300 = vperm.xlu0 %661, %v282_v5   ;;  %v342_v18 = vsel %vm313_vm0, %v266_v13, 0  ;;  %v272_v23 = vpack.c.bf16 %v254_v21, %v253_v20  ;;  %v238_v25 = vld [vmem:[%s835_s17 + $0x58] sm:$0xff]  ;;  %v252_v28 = vld [vmem:[%s835_s17 + $0xc8] sm:$0xff]  ;;  %v235_v31 = vld [vmem:[%s835_s17 + $0x40] sm:$0xff]  ;;  %p682_p2 = por %p681_p1, %p680_p0 }
  0x1b   : > { %594 = vmatpush3.bf16.xpose.msra.mxu0 %v342_v18  ;;  %v339_v22 = vsel %vm313_vm0, %v265_v19, 0  ;;  %v264_v26 = vpack.c.bf16 %v238_v25, %v237_v24  ;;  %v271_v30 = vpack.c.bf16 %v252_v28, %v251_v27  ;;  %v236_v32 = vld [vmem:[%s835_s17 + $0x48] sm:$0xff]  ;;  %v249_v34 = vld [vmem:[%s835_s17 + $0xb0] sm:$0xff]  ;;  %v250_v35 = vld [vmem:[%s835_s17 + $0xb8] sm:$0xff] }
  0x1c   : > { %614 = vmatprep.subr.msk.bf16.mxu0 %vm313_vm0, %v273_v14  ;;  %v263_v33 = vpack.c.bf16 %v236_v32, %v235_v31  ;;  %v270_v37 = vpack.c.bf16 %v250_v35, %v249_v34  ;;  %v233_v38 = vld [vmem:[%s835_s17 + $0x30] sm:$0xff]  ;;  %v234_v39 = vld [vmem:[%s835_s17 + $0x38] sm:$0xff]  ;;  %v247_v41 = vld [vmem:[%s835_s17 + $0xa0] sm:$0xff]  ;;  %p683_p3 = pnand %p682_p2, %p676_p13 }
  0x1d   : > { %v336_v29 = vsel %vm313_vm0, %v264_v26, 0  ;;  %v262_v40 = vpack.c.bf16 %v234_v39, %v233_v38  ;;  %v248_v42 = vld [vmem:[%s835_s17 + $0xa8] sm:$0xff]  ;;  %v231_v45 = vld [vmem:[%s835_s17 + $0x20] sm:$0xff]  ;;  %v245_v48 = vld [vmem:[%s835_s17 + $0x90] sm:$0xff] }
  0x1e   : > { %437 = vperm.xlu0 %661, %v434_v17   ;;  %v333_v36 = vsel %vm313_vm0, %v263_v33, 0  ;;  %v269_v44 = vpack.c.bf16 %v248_v42, %v247_v41  ;;  %v232_v46 = vld [vmem:[%s835_s17 + $0x28] sm:$0xff]  ;;  %v246_v49 = vld [vmem:[%s835_s17 + $0x98] sm:$0xff]  ;;  %v229_v52 = vld [vmem:[%s835_s17 + $0x10] sm:$0xff] }
  0x1f   : > { %v330_v43 = vsel %vm313_vm0, %v262_v40, 0  ;;  %v261_v47 = vpack.c.bf16 %v232_v46, %v231_v45  ;;  %v268_v51 = vpack.c.bf16 %v246_v49, %v245_v48  ;;  %v230_v53 = vld [vmem:[%s835_s17 + $0x18] sm:$0xff]  ;;  %v243_v55 = vld [vmem:[%s835_s17 + $0x80] sm:$0xff]  ;;  %v244_v56 = vld [vmem:[%s835_s17 + $0x88] sm:$0xff] }
  0x20   : > { %v260_v54 = vpack.c.bf16 %v230_v53, %v229_v52  ;;  %v267_v58 = vpack.c.bf16 %v244_v56, %v243_v55  ;;  %v227_v59 = vld [vmem:[%s835_s17] sm:$0xff]  ;;  %v228_v60 = vld [vmem:[%s835_s17 + $0x8] sm:$0xff]  ;;  %s906_s17 = scalar_lea.hbm %s946_s5, %s592_s12 }
  0x21   : > { %v327_v50 = vsel %vm313_vm0, %v261_v47, 0  ;;  %v259_v61 = vpack.c.bf16 %v228_v60, %v227_v59  ;;  %v429_v32 = vld [vmem:[%s944_s3] sm:$0xf] }
  0x22   : > { %v324_v57 = vsel %vm313_vm0, %v260_v54, 0 }
  0x23   : > { %596 = vmatpush3.bf16.xpose.msra.mxu0 %v339_v22  ;;  %v321_v62 = vsel %vm313_vm0, %v259_v61, 0 }
  0x24   : > { %615 = vmatprep.subr.msk.bf16.mxu0 %vm313_vm0, %v272_v23 }
  0x2b   : > { %598 = vmatpush3.bf16.xpose.msra.mxu0 %v336_v29 }
  0x2c   : > { %616 = vmatprep.subr.msk.bf16.mxu0 %vm313_vm0, %v271_v30 }
  0x33   : > { %600 = vmatpush3.bf16.xpose.msra.mxu0 %v333_v36 }
  0x34   : > { %617 = vmatprep.subr.msk.bf16.mxu0 %vm313_vm0, %v270_v37 }
  0x3b   : > { %602 = vmatpush3.bf16.xpose.msra.mxu0 %v330_v43 }
  0x3c   : > { %618 = vmatprep.subr.msk.bf16.mxu0 %vm313_vm0, %v269_v44 }
  0x43   : > { %604 = vmatpush3.bf16.xpose.msra.mxu0 %v327_v50 }
  0x44   : > { %619 = vmatprep.subr.msk.bf16.mxu0 %vm313_vm0, %v268_v51 }
  0x4b   : > { %606 = vmatpush3.bf16.xpose.msra.mxu0 %v324_v57 }
  0x4c   : > { %620 = vmatprep.subr.msk.bf16.mxu0 %vm313_vm0, %v267_v58 }
  0x53   : > { %608 = vmatpush3.bf16.xpose.msra.mxu0 %v321_v62 }
  0x5a   : > { %610 = vmatmul.mubr.msk.bf16.vlgmr.msra.gmra.mxu0 %vm313_vm0, %v819_v0 }
  0x5b   : > { %611 = vmatprep.mubr.msk.bf16.mxu0 %vm313_vm0, %v664_v63 }
  0x62   : > { %612 = vmatmul.mubr.msk.bf16.gmra.mxu0 %vm313_vm0, %v664_v63 }
  0x90   : > { %v286_v4 = vpop.permute.xlu1 %285 }
  0x91   : > { %v296_v5 = vpop.permute.xlu0 %295 }
  0x94   : > { %v291_v9 = vpop.permute.xlu1 %290 }
  0x95   : > { %v301_v10 = vpop.permute.xlu0 %300 }
  0x99   : > { %v438_v33 = vpop.permute.xlu0 %437 }
 0x11a   : > { %v402_v1 = vpop.f32.mrf.mxu0 }
 0x11b   : > { %v403_v23 = vadd.f32 %v402_v1, %v286_v4 }
 0x11c   : > { %v404_v2 = vpop.f32.mrf.mxu0 }
 0x11d   : > { %v405_v16 = vadd.f32 %v404_v2, %v286_v4  ;;  %v421_v30 = vmax.f32 %v403_v23, 0.0 }
 0x11e   : > { %v406_v3 = vpop.f32.mrf.mxu0 }
 0x11f   : > { %v407_v18 = vadd.f32 %v406_v3, %v291_v9  ;;  %v422_v25 = vmax.f32 %v405_v16, 0.0 }
 0x120   : > { %v408_v6 = vpop.f32.mrf.mxu0 }
 0x121   : > { %v409_v12 = vadd.f32 %v408_v6, %v291_v9  ;;  %v423_v27 = vmax.f32 %v407_v18, 0.0 }
 0x122   : > { %v412_v7 = vpop.f32.mrf.mxu0 }
 0x123   : > { %v413_v15 = vadd.f32 %v412_v7, %v296_v5  ;;  %v424_v20 = vmax.f32 %v409_v12, 0.0  ;;  %v430_v31 = vpack.c.bf16 %v423_v27, %v421_v30 }
 0x124   : > { %v414_v8 = vpop.f32.mrf.mxu0 }
 0x125   : > { %v415_v13 = vadd.f32 %v414_v8, %v296_v5  ;;  %v425_v24 = vmax.f32 %v413_v15, 0.0  ;;  %v431_v29 = vpack.c.bf16 %v424_v20, %v422_v25 }
 0x126   : > { %v416_v11 = vpop.f32.mrf.mxu0 }
 0x127   : > { %v417_v14 = vadd.f32 %v416_v11, %v301_v10  ;;  %v426_v21 = vmax.f32 %v415_v13, 0.0 }
 0x128   : > { %v418_v0 = vpop.f32.mrf.mxu0 }
 0x129   : > { %v419_v17 = vadd.f32 %v418_v0, %v301_v10  ;;  %v427_v19 = vmax.f32 %v417_v14, 0.0 }
 0x12b   : > { %v428_v22 = vmax.f32 %v419_v17, 0.0  ;;  %v432_v28 = vpack.c.bf16 %v427_v19, %v425_v24 }
 0x12d   : > { %v433_v26 = vpack.c.bf16 %v428_v22, %v426_v21 }
 0x12f   : > { %456 = vmatprep.subr.bf16.mxu1 %v433_v26 }
 0x130   : > { %457 = vmatpush1.bf16.msra.mxu1 %v432_v28 }
 0x131   : > { %458 = vmatprep.subr.bf16.mxu1 %v431_v29 }
 0x134   : > { %459 = vmatpush1.bf16.msra.mxu1 %v430_v31 }
 0x137   : > { %584 = vmatmul.mubr.msk.bf16.vlgmr.msra.gmra.mxu1 %vm440_vm1, %v429_v32 }
 0x1f7   : > { %v478_v34 = vpop.f32.mrf.mxu1 }
 0x1f8   : > { %v479_v35 = vadd.f32 %v478_v34, %v438_v33 }
 0x1f9   : > { %v480_v36 = vpop.f32.mrf.mxu1 }
 0x1fa   : > { %v585_v37 = vmul.f32 -1.442695, %v479_v35  ;;  %v481_v38 = vadd.f32 %v480_v36, %v438_v33 }
 0x1fb   : > { %v482_v39 = vpop.f32.mrf.mxu1 }
 0x1fc   : > { %665 = vpow2.f32 %v585_v37  ;;  %v586_v40 = vmul.f32 -1.442695, %v481_v38 }
 0x1fd   : > { %v483_v41 = vpop.f32.mrf.mxu1 }
 0x1fe   : > { %667 = vpow2.f32 %v586_v40 }
 0x209   : > { %v666_v42 = vpop.eup %665 }
 0x20a   : > { %v491_v43 = vadd.f32 1.0, %v666_v42 }
 0x20b   : > { %v668_v44 = vpop.eup %667 }
 0x20c   : > { %669 = vrcp.f32 %v491_v43  ;;  %v492_v45 = vadd.f32 1.0, %v668_v44 }
 0x20e   : > { %671 = vrcp.f32 %v492_v45 }
 0x219   : > { %v670_v46 = vpop.eup %669 }
 0x21a   : > { %497 = vst [vmem:[%s218_s13] sm:$0xff] %v670_v46 }
 0x21b   : > { %v672_v47 = vpop.eup %671 }
 0x21c   : > { %498 = vst [vmem:[%s218_s13 + $0x8] sm:$0xff] %v672_v47 }
 0x21d   : > { %686 = shalt.err (!%p683_p3)
}
 0x21e   : > { %s687_s6 = scalar_lea.hbm %s906_s17, 256  ;;  %s691_s9 = scalar_lea.hbm %s946_s5, 512 }
 0x21f   : > { %p688_p4 = scmp.ne.s32.totalorder %s906_s17, %s687_s6  ;;  %p692_p9 = scmp.lt.s32.totalorder %s906_s17, %s946_s5 }
 0x220   : > { %p693_p10 = scmp.lt.s32.totalorder %s691_s9, %s687_s6 }
 0x221   : > { %p689_p7 = pnand %p688_p4, %p805_p5 }
 0x222   : > { %p694_p11 = por %p693_p10, %p692_p9 }
 0x223   : > { %p690_p8 = pneg %p689_p7 }
 0x225   : > { %p695_p12 = pnand %p694_p11, %p690_p8 }
 0x227   : > { %698 = shalt.err (!%p695_p12)
}
 0x228   : > { %621 = dma.vmem_to_hbm [thread:$0]  (%p805_p5), %s515_s14, 256, %s906_s17, %s500_s23  }
 0x229 PF: > { %p627_p13 = scmp.ge.s32.totalorder %s733_s21, 2  ;;  %s526_s12 = sand.u32 1, %s721_s18  }
 0x22a   : > { %s527_s13 = scalar_lea.sflag [#allocation3], %s526_s12 }
 0x22b   : > { %p624_p0 = pnand %p627_p13, %p809_p6 }
 0x22d   : > { %p625_p1 = pneg %p624_p0 }
 0x22f   : > { %716 = dma.done.wait (%p625_p1), %s527_s13, 256  }
 0x230   : > { %718 = vsyncadd (%p625_p1), %s527_s13, 4294967040  ;;  %p15_p2 = scmp.ge.s32.totalorder %s792_s24, 4   ;;  %s949_s18 = smov %s725_s19 }
 0x231   : > { %s950_s19 = smov %s729_s20  ;;  %s951_s20 = smov %s803_s27 }
 0x232   : > { %s952_s21 = smov %s792_s24  ;;  %17 = sbr.rel (!%p15_p2) target bundleno = 3 (0x3), region = 75 }
 0x237   :  { %532 = vsyncpa [#allocation3], 1 }
 0x238   :  { %534 = vsyncpa [#allocation3 + $0x1], 1 }

</bundles_post_ra>
